<compile_context>
chip_gen: v7x
topology: tpu7x:2x2x1
jax: 0.10.0
libtpu: 0.0.40
codegen_flags: <defaults>
</compile_context>

<pallas_src>
import jax
import jax.numpy as jnp
from jax.experimental import pallas as pl
from jax.experimental.pallas import tpu as pltpu


def _interpretation_kernel(h_ref, mask_ref, w_ref, b_ref, H_ref, a_ref):
    # h_ref:    (TB, S, D)  span representations, native dtype (not copied to f32)
    # mask_ref: (TB, 1, S)  span masks, native dtype
    # w_ref:    (1, 1, D)   Linear weight row, in h's dtype
    # b_ref:    (1,)        Linear bias (f32), resident in SMEM
    # H_ref:    (TB, 1, D)  out: attention-pooled representation
    # a_ref:    (TB, 1, S)  out: attention weights
    h = h_ref[...]                                          # native dtype
    tb, _, d = h.shape
    w = jnp.broadcast_to(w_ref[...], (tb, 1, d))            # (TB, 1, D), native dtype

    # Linear(hidden -> 1): batched matvec on the MXU, f32 accumulation.
    o = jnp.einsum("bod,bsd->bos", w, h,
                   preferred_element_type=jnp.float32)      # (TB, 1, S)
    o = o + b_ref[0] - mask_ref[...].astype(jnp.float32)    # (TB, 1, S)

    # Numerically stable softmax over the span (lane) axis.
    m = jnp.max(o, axis=-1, keepdims=True)                  # (TB, 1, 1)
    e = jnp.exp(o - m)                                      # (TB, 1, S)
    s = jnp.sum(e, axis=-1, keepdims=True)                  # (TB, 1, 1)
    inv_s = pl.reciprocal(s, approx=True)                   # EUP slot
    inv_s = inv_s * (2.0 - s * inv_s)                       # Newton step -> ~f32 exact
    a = e * inv_s                                           # (TB, 1, S) f32

    # H_bd = sum_s a_bs * h_bsd : batched contraction over S on the MXU.
    H = jnp.einsum("bos,bsd->bod", a.astype(h.dtype), h,
                   preferred_element_type=jnp.float32)      # (TB, 1, D)

    H_ref[...] = H.astype(H_ref.dtype)
    a_ref[...] = a.astype(a_ref.dtype)


def _pick_block_b(B, S, D, itemsize, vmem_cap, vmem_limit):
    """Batch-tile size.  block_b is the third-from-last dim of every block, so
    it is not constrained by the (8,128) rule -- sized purely against VMEM."""
    row_h = S * D * itemsize
    if B <= 8 or row_h == 0:
        return B
    # VMEM per batch row in a tile:
    #   - double-buffered native-dtype h slab (dominant term),
    #   - sublane-padded (TB,1,D) intermediates of the q=1 MXU contractions
    #     (broadcast weight row + f32 H accumulator + output block),
    #   - (TB,1,S)-shaped mask / softmax temporaries / a_ij output.
    per_row = 2 * row_h
    per_row += 8 * D * (2 * itemsize + 8)
    per_row += 8 * S * (2 * itemsize + 20)
    ws = (vmem_limit * 3) // 4
    tb = max(1, ws // per_row)
    # Diminishing returns past ~16 MiB of h per tile (step overhead already <5%).
    tb = min(tb, max(1, (16 * 1024 * 1024) // row_h))
    tb = min(tb, B)
    # v7x heuristic (64 MiB VMEM per TensorCore => 2 TCs): keep >= 2 grid steps
    # so dimension_semantics=("parallel",) can shard the batch across both
    # cores.  Single-TC v5e/v6e keep one big step when it fits.
    if vmem_cap <= 64 * 1024 * 1024:
        tb = min(tb, max(1, -(-B // 2)))
    # Prefer a block size that exactly divides B (no padded remainder step)
    # as long as it stays within ~25% of the budgeted size.
    for cand in range(tb, max(1, (tb * 3) // 4) - 1, -1):
        if B % cand == 0:
            return cand
    return tb


def interpretation_model(h_ij, span_masks, weight, bias, *, block_b=None):
    """h_ij: (B, S, D) float (streamed in its native dtype, e.g. bf16 or f32),
       span_masks: (B, S), weight: (1, D) PyTorch Linear weight, bias: (1,)."""
    B, S, D = h_ij.shape
    itemsize = jnp.dtype(h_ij.dtype).itemsize

    try:
        vmem_cap = int(pltpu.get_tpu_info().vmem_capacity_bytes)
    except Exception:
        vmem_cap = 64 * 1024 * 1024          # conservative (v7x per-TC) fallback
    # Generation-aware scoped-VMEM limit: ~48 MiB on v7x (64 MiB physical),
    # ~96 MiB on v5e/v6e (128 MiB physical).
    vmem_limit = int(min(96 * 1024 * 1024,
                         max(32 * 1024 * 1024, (vmem_cap * 3) // 4)))

    if block_b is None:
        block_b = _pick_block_b(B, S, D, itemsize, vmem_cap, vmem_limit)
    grid_b = pl.cdiv(B, block_b)

    w_row = weight.reshape(1, 1, D).astype(h_ij.dtype)   # lane-dense weight row
    b1 = bias.reshape(1).astype(jnp.float32)             # scalar -> SMEM
    mask3 = span_masks.reshape(B, 1, S)                  # native dtype, free reshape
    out_dtype = h_ij.dtype
    mbytes = jnp.dtype(span_masks.dtype).itemsize

    cost = pl.CostEstimate(
        flops=4 * B * S * D + 8 * B * S,                  # two matmuls + softmax
        transcendentals=B * S + B,
        bytes_accessed=(B * S * D * itemsize              # h_ij read
                        + B * S * mbytes                  # mask read
                        + B * S * itemsize                # a_ij write
                        + B * D * itemsize                # H write
                        + D * itemsize + 4),              # weight + bias
    )

    H3, a3 = pl.pallas_call(
        _interpretation_kernel,
        out_shape=(
            jax.ShapeDtypeStruct((B, 1, D), out_dtype),
            jax.ShapeDtypeStruct((B, 1, S), out_dtype),
        ),
        grid_spec=pltpu.PrefetchScalarGridSpec(
            num_scalar_prefetch=0,
            grid=(grid_b,),
            in_specs=[
                pl.BlockSpec((block_b, S, D), lambda b: (b, 0, 0)),
                pl.BlockSpec((block_b, 1, S), lambda b: (b, 0, 0)),
                pl.BlockSpec((1, 1, D), lambda b: (0, 0, 0)),
                pl.BlockSpec(memory_space=pltpu.MemorySpace.SMEM),
            ],
            out_specs=[
                pl.BlockSpec((block_b, 1, D), lambda b: (b, 0, 0)),
                pl.BlockSpec((block_b, 1, S), lambda b: (b, 0, 0)),
            ],
        ),
        compiler_params=pltpu.CompilerParams(
            dimension_semantics=("parallel",),
            vmem_limit_bytes=vmem_limit,
        ),
        cost_estimate=cost,
    )(h_ij, mask3, w_row, b1)

    # Free reshapes back to the PyTorch output shapes.
    return H3.reshape(B, D), a3.reshape(B, S)


def _reference(h_ij, span_masks, weight, bias):
    o = jnp.einsum("bsd,od->bso", h_ij, weight,
                   precision=jax.lax.Precision.HIGHEST)[..., 0] + bias[0]
    o = o - span_masks
    a = jax.nn.softmax(o, axis=1)
    H = jnp.einsum("bs,bsd->bd", a, h_ij, precision=jax.lax.Precision.HIGHEST)
    return H, a


if __name__ == "__main__":
    B, S, D = 2, 8, 32  # batch, span count, hidden size
    key = jax.random.PRNGKey(0)
    k1, k2, k3, k4 = jax.random.split(key, 4)

    h_ij = jax.random.normal(k1, (B, S, D), dtype=jnp.float32)
    # span_masks in practice are 0 / large-positive; use a mix here
    span_masks = jnp.where(
        jax.random.uniform(k2, (B, S)) > 0.7, 1e4, 0.0
    ).astype(jnp.float32)

    # deterministic Linear(hidden_size, 1) parameters
    weight = (jax.random.normal(k3, (1, D), dtype=jnp.float32)
              * (1.0 / jnp.sqrt(D)))
    bias = jax.random.normal(k4, (1,), dtype=jnp.float32) * 0.01

    H, a_ij = interpretation_model(h_ij, span_masks, weight, bias)
    jax.block_until_ready((H, a_ij))

    H_ref, a_ref = _reference(h_ij, span_masks, weight, bias)
    # Tolerance covers possible reduced-precision MXU passes for f32 matmuls.
    assert jnp.allclose(a_ij, a_ref, atol=2e-2, rtol=2e-2), "a_ij mismatch"
    assert jnp.allclose(H, H_ref, atol=2e-2, rtol=2e-2), "H mismatch"
    assert jnp.allclose(jnp.sum(a_ij, axis=1), 1.0, atol=1e-3), "softmax not normalized"

    print("KERNEL_OK")
</pallas_src>

<mosaic_0001>
module attributes {stable_mosaic.version = 11 : i64} {
  func.func @_interpretation_kernel(%arg0: i32, %arg1: memref<2x8x32xf32, #tpu.memory_space<vmem>>, %arg2: memref<2x1x8xf32, #tpu.memory_space<vmem>>, %arg3: memref<1x1x32xf32, #tpu.memory_space<vmem>>, %arg4: memref<1xf32, #tpu.memory_space<smem>>, %arg5: memref<2x1x32xf32, #tpu.memory_space<vmem>>, %arg6: memref<2x1x8xf32, #tpu.memory_space<vmem>>) attributes {dimension_semantics = [#tpu.dimension_semantics<parallel>], iteration_bounds = array<i64: 1>, scalar_prefetch = 0 : i64, scratch_operands = 0 : i64, tpu.core_type = #tpu.core_type<tc>, window_params = [{transform_indices = @transform_0, window_bounds = array<i64: 2, 8, 32>}, {transform_indices = @transform_1, window_bounds = array<i64: 2, 1, 8>}, {pipeline_mode = #tpu.pipeline_mode<synchronous>, transform_indices = @transform_2, window_bounds = array<i64: 1, 1, 32>}, {transform_indices = @transform_3, window_bounds = array<i64: 1>}, {transform_indices = @transform_4, window_bounds = array<i64: 2, 1, 32>}, {transform_indices = @transform_5, window_bounds = array<i64: 2, 1, 8>}]} {
    %c0 = arith.constant 0 : index
    %c0_0 = arith.constant 0 : index
    %c0_1 = arith.constant 0 : index
    %0 = vector.load %arg1[%c0, %c0_0, %c0_1] : memref<2x8x32xf32, #tpu.memory_space<vmem>>, vector<2x8x32xf32>
    %c0_2 = arith.constant 0 : index
    %c0_3 = arith.constant 0 : index
    %c0_4 = arith.constant 0 : index
    %1 = vector.load %arg3[%c0_2, %c0_3, %c0_4] : memref<1x1x32xf32, #tpu.memory_space<vmem>>, vector<1x1x32xf32>
    %2 = vector.shape_cast %1 : vector<1x1x32xf32> to vector<1x1x32xf32>
    %3 = vector.broadcast %2 : vector<1x1x32xf32> to vector<2x1x32xf32>
    "tpu.trace_start"() <{level = 10 : i32, message = "bod,bsd->bos"}> : () -> ()
    %cst = arith.constant dense<0.000000e+00> : vector<2x1x8xf32>
    %4 = tpu.matmul %3, %0, %cst {dimension_numbers = #tpu.dot_dimension_numbers<[2], [2], [1], [1], [0, 0, 0, 1, 1, 1], [0], [0]>} : vector<2x1x32xf32>, vector<2x8x32xf32>, vector<2x1x8xf32> -> vector<2x1x8xf32>
    "tpu.trace_stop"() : () -> ()
    %c0_5 = arith.constant 0 : index
    %5 = memref.load %arg4[%c0_5] : memref<1xf32, #tpu.memory_space<smem>>
    %6 = vector.broadcast %5 : f32 to vector<2x1x8xf32>
    %7 = arith.addf %4, %6 : vector<2x1x8xf32>
    %c0_6 = arith.constant 0 : index
    %c0_7 = arith.constant 0 : index
    %c0_8 = arith.constant 0 : index
    %8 = vector.load %arg2[%c0_6, %c0_7, %c0_8] : memref<2x1x8xf32, #tpu.memory_space<vmem>>, vector<2x1x8xf32>
    %9 = arith.subf %7, %8 : vector<2x1x8xf32>
    %cst_9 = arith.constant dense<0xFF800000> : vector<2x1xf32>
    %10 = vector.multi_reduction <maximumf>, %9, %cst_9 [2] : vector<2x1x8xf32> to vector<2x1xf32>
    %11 = vector.shape_cast %10 : vector<2x1xf32> to vector<2x1x1xf32>
    %12 = vector.broadcast %11 : vector<2x1x1xf32> to vector<2x1x8xf32>
    %13 = arith.subf %9, %12 : vector<2x1x8xf32>
    %14 = math.exp %13 : vector<2x1x8xf32>
    %cst_10 = arith.constant dense<0.000000e+00> : vector<2x1xf32>
    %15 = vector.multi_reduction <add>, %14, %cst_10 [2] : vector<2x1x8xf32> to vector<2x1xf32>
    %16 = vector.shape_cast %15 : vector<2x1xf32> to vector<2x1x1xf32>
    %17 = tpu.reciprocal %16 {approx = true} : vector<2x1x1xf32> -> vector<2x1x1xf32>
    %18 = arith.mulf %16, %17 : vector<2x1x1xf32>
    %cst_11 = arith.constant 2.000000e+00 : f32
    %19 = vector.broadcast %cst_11 : f32 to vector<2x1x1xf32>
    %20 = arith.subf %19, %18 : vector<2x1x1xf32>
    %21 = arith.mulf %17, %20 : vector<2x1x1xf32>
    %22 = vector.broadcast %21 : vector<2x1x1xf32> to vector<2x1x8xf32>
    %23 = arith.mulf %14, %22 : vector<2x1x8xf32>
    "tpu.trace_start"() <{level = 10 : i32, message = "bos,bsd->bod"}> : () -> ()
    %cst_12 = arith.constant dense<0.000000e+00> : vector<2x1x32xf32>
    %24 = tpu.matmul %23, %0, %cst_12 {dimension_numbers = #tpu.dot_dimension_numbers<[2], [1], [1], [2], [0, 0, 0, 1, 1, 2], [0], [0]>} : vector<2x1x8xf32>, vector<2x8x32xf32>, vector<2x1x32xf32> -> vector<2x1x32xf32>
    "tpu.trace_stop"() : () -> ()
    %c0_13 = arith.constant 0 : index
    %c0_14 = arith.constant 0 : index
    %c0_15 = arith.constant 0 : index
    %25 = vector.load %arg5[%c0_13, %c0_14, %c0_15] : memref<2x1x32xf32, #tpu.memory_space<vmem>>, vector<2x1x32xf32>
    tpu.vector_store %arg5[%c0_13, %c0_14, %c0_15], %24 {strides = array<i32>} : memref<2x1x32xf32, #tpu.memory_space<vmem>>, vector<2x1x32xf32>,
    %c0_16 = arith.constant 0 : index
    %c0_17 = arith.constant 0 : index
    %c0_18 = arith.constant 0 : index
    %26 = vector.load %arg6[%c0_16, %c0_17, %c0_18] : memref<2x1x8xf32, #tpu.memory_space<vmem>>, vector<2x1x8xf32>
    tpu.vector_store %arg6[%c0_16, %c0_17, %c0_18], %23 {strides = array<i32>} : memref<2x1x8xf32, #tpu.memory_space<vmem>>, vector<2x1x8xf32>,
    return
  }
  func.func @transform_0(%arg0: i32) -> (i32, i32, i32) {
    %c0_i32 = arith.constant 0 : i32
    %c0_i32_0 = arith.constant 0 : i32
    %c0_i32_1 = arith.constant 0 : i32
    return %arg0, %c0_i32, %c0_i32_0 : i32, i32, i32
  }
  func.func @transform_1(%arg0: i32) -> (i32, i32, i32) {
    %c0_i32 = arith.constant 0 : i32
    %c0_i32_0 = arith.constant 0 : i32
    %c0_i32_1 = arith.constant 0 : i32
    return %arg0, %c0_i32, %c0_i32_0 : i32, i32, i32
  }
  func.func @transform_2(%arg0: i32) -> (i32, i32, i32) {
    %c0_i32 = arith.constant 0 : i32
    %c0_i32_0 = arith.constant 0 : i32
    %c0_i32_1 = arith.constant 0 : i32
    %c0_i32_2 = arith.constant 0 : i32
    return %c0_i32, %c0_i32_0, %c0_i32_1 : i32, i32, i32
  }
  func.func @transform_3(%arg0: i32) -> i32 {
    %c0_i32 = arith.constant 0 : i32
    %c0_i32_0 = arith.constant 0 : i32
    return %c0_i32 : i32
  }
  func.func @transform_4(%arg0: i32) -> (i32, i32, i32) {
    %c0_i32 = arith.constant 0 : i32
    %c0_i32_0 = arith.constant 0 : i32
    %c0_i32_1 = arith.constant 0 : i32
    return %arg0, %c0_i32, %c0_i32_0 : i32, i32, i32
  }
  func.func @transform_5(%arg0: i32) -> (i32, i32, i32) {
    %c0_i32 = arith.constant 0 : i32
    %c0_i32_0 = arith.constant 0 : i32
    %c0_i32_1 = arith.constant 0 : i32
    return %arg0, %c0_i32, %c0_i32_0 : i32, i32, i32
  }
}

</mosaic_0001>

<bundles_post_ra>
// kernel: tpu_custom_call.1
= control target key start
LH: loop header
LB: loop body
LE: loop exit
PB: predicated region body
PF: predicated region fallthrough
CT: control target
= control target key end

     0   :  { %12 = vsyncpa [#allocation4], 0  ;;  %s629_s0 = inlined_call_operand.hbm [shape: f32[2,8,32], index: 0, kind: input, shape index: {}]   ;;  %s630_s1 = inlined_call_operand.vmem [shape: f32[2,1,8], index: 1, kind: input, shape index: {}]   ;;  %s631_s2 = inlined_call_operand.vmem [shape: f32[1,1,32], index: 2, kind: input, shape index: {}]   ;;  %s632_s3 = inlined_call_operand.<no memory space> [shape: f32[1], index: 3, kind: input, shape index: {}]   ;;  %s633_s4 = inlined_call_operand.hbm [shape: f32[2,1,32], index: 4, kind: output, shape index: {0}]   ;;  %s634_s5 = inlined_call_operand.hbm [shape: f32[2,1,8], index: 5, kind: output, shape index: {1}]  }
   0x1   :  { %13 = vsyncpa [#allocation5], 0 }
   0x2   :  { %14 = vsyncpa [#allocation8], 0  ;;  %s532_s18 = smov [#allocation3]   ;;  %s460_s22 = scalar_lea.hbm %s629_s0, 256 }
   0x3   :  { %s20_s19 = sshll.u32 %s532_s18, 4  ;;  %p461_p0 = scmp.ne.s32.totalorder %s629_s0, %s460_s22  ;;  %s21_s19 = int_to_ptr.vmem [resolvable:$true] %s20_s19 }
   0x4   :  { %p464_p1 = scmp.lt.u32.totalorder %s460_s22, %s629_s0 }
   0x6   :  { %p466_p2 = pnand %p464_p1, %p461_p0 }
   0x8   :  { %469 = shalt.err (!%p466_p2)
}
   0x9   :  { %s470_s27 = scalar_lea.vmem %s21_s19, 256  ;;  %p475_p4 = scmp.lt.s32.totalorder %s21_s19, %s21_s19 }
   0xa   :  { %p471_p3 = scmp.ne.s32.totalorder %s21_s19, %s470_s27  ;;  %p476_p5 = scmp.lt.s32.totalorder %s470_s27, %s470_s27 }
   0xc   :  { %p477_p6 = por %p476_p5, %p475_p4 }
   0xe   :  { %p478_p7 = pnand %p477_p6, %p471_p3 }
  0x10   :  { %481 = shalt.err (!%p478_p7)
}
  0x11   :  { %s533_s28 = smov 128   ;;  %s534_s29 = smov 8  }
  0x12   :  { %26 = dma.hbm_to_vmem [thread:$0]  %s629_s0, 256, %s21_s19, [#allocation4], %s533_s28, %s533_s28, %s534_s29  }
  0x13   :  { %526 = dma.done.wait [#allocation4], 256  }
  0x14   :  { %527 = vsyncadd [#allocation4], 4294967040  ;;  %v535_v0 = vmov 0.0   ;;  %vm536_vm0 = vmmov 0   ;;  %vm41_vm1 = vcmask 261120   ;;  %v36_v1 = vld [vmem:[#allocation3] sm:$0xff]  ;;  %v40_v4 = vstv %s632_s3 }
  0x15   :  { %423 = vmatprep.subr.mxu0 %v535_v0  ;;  %425 = vmatprep.mubr.msk.f32.mxu0 %vm536_vm0, %v535_v0  ;;  %v37_v2 = vld [vmem:[#allocation3 + $0x8] sm:$0xff]  ;;  %v38_v3 = vld [vmem:[%s631_s2] sm:$0x1]  ;;  %v192_v8 = vld [vmem:[%s630_s1 + $0x1] sm:$0x1]  ;;  %vm195_vm2 = vcmask 57344  }
  0x16   :  { %428 = vmatprep.subr.mxu1 %v535_v0  ;;  %430 = vmatprep.mubr.msk.f32.mxu1 %vm536_vm0, %v535_v0  ;;  %v191_v7 = vld [vmem:[%s630_s1] sm:$0x1]  ;;  %vm224_vm3 = vcmask 64512   ;;  %s537_s1 = smov [#allocation7]  }
  0x17   :  { %424 = vmatpush3.xpose.msk.msra.mxu0 %vm41_vm1, %v36_v1  ;;  %429 = vmatpush3.xpose.msk.msra.mxu1 %vm41_vm1, %v37_v2  ;;  %s393_s3 = sshll.u32 %s537_s1, 4  ;;  %s394_s3 = int_to_ptr.vmem [resolvable:$true] %s393_s3 }
  0x18   :  { %433 = vmatprep.subr.mxu0 %v535_v0  ;;  %438 = vmatprep.subr.mxu1 %v535_v0  ;;  %s482_s13 = scalar_lea.vmem %s394_s3, 32  ;;  %p487_p9 = scmp.lt.s32.totalorder %s394_s3, %s394_s3 }
  0x19   :  { %p483_p8 = scmp.ne.s32.totalorder %s394_s3, %s482_s13  ;;  %p488_p10 = scmp.lt.s32.totalorder %s482_s13, %s482_s13 }
  0x1a   :  { %426 = vmatmul.mubr.msk.f32.vlgmr.msra.gmra.mrb[0].mxu0 %vm41_vm1, %v38_v3  ;;  %431 = vmatmul.mubr.msk.f32.vlgmr.msra.gmra.mrb[0].mxu1 %vm41_vm1, %v38_v3 }
  0x1b   :  { %434 = vmatpush3.msra.mxu0 %v36_v1  ;;  %435 = vmatprep.mubr.msk.f32.mxu0 %vm536_vm0, %v535_v0  ;;  %p489_p11 = por %p488_p10, %p487_p9 }
  0x1c   :  { %439 = vmatpush3.msra.mxu1 %v37_v2  ;;  %440 = vmatprep.mubr.msk.f32.mxu1 %vm536_vm0, %v535_v0 }
  0x1d   :  { %p490_p12 = pnand %p489_p11, %p483_p8 }
  0xed   :  { %v114_v5 = vpop.f32.mrb[0].mxu0  ;;  %v187_v6 = vpop.f32.mrb[0].mxu1 }
  0xee   :  { %v115_v9 = vadd.f32 %v114_v5, %v40_v4  ;;  %v427_v10 = vpop.f32.mrb[1].mxu0  ;;  %v188_v11 = vadd.f32 %v187_v6, %v40_v4  ;;  %v432_v12 = vpop.f32.mrb[1].mxu1 }
  0xf0   :  { %v193_v13 = vsub.f32 %v115_v9, %v191_v7  ;;  %v194_v14 = vsub.f32 %v188_v11, %v192_v8 }
  0xf2   :  { %v196_v15 = vsel %vm195_vm2, %v193_v13, -inf  ;;  %v199_v16 = vsel %vm195_vm2, %v194_v14, -inf }
  0xf3   :  { %197 = vmax.xlane.f32.xlu0 %v196_v15 }
  0xf7   :  { %200 = vmax.xlane.f32.xlu0 %v199_v16 }
 0x180   :  { %v198_v17 = vpop.xlane.xlu0 %197 }
 0x181   :  { %v202_v18 = vsub.f32 %v193_v13, %v198_v17 }
 0x183   :  { %v204_v19 = vmul.f32 1.442695, %v202_v18 }
 0x184   :  { %v201_v20 = vpop.xlane.xlu0 %200 }
 0x185   :  { %452 = vpow2.f32 %v204_v19  ;;  %v203_v21 = vsub.f32 %v194_v14, %v201_v20 }
 0x187   :  { %v206_v22 = vmul.f32 1.442695, %v203_v21 }
 0x189   :  { %454 = vpow2.f32 %v206_v22 }
 0x18f   :  { %v453_v23 = vpop.eup %452 }
 0x190   :  { %v208_v24 = vsel %vm195_vm2, %v453_v23, 0.0 }
 0x191   :  { %209 = vadd.xlane.f32.xlu1 %v208_v24 }
 0x193   :  { %v455_v25 = vpop.eup %454 }
 0x194   :  { %v211_v26 = vsel %vm195_vm2, %v455_v25, 0.0 }
 0x195   :  { %212 = vadd.xlane.f32.xlu1 %v211_v26 }
 0x21e   :  { %v210_v27 = vpop.xlane.xlu1 %209 }
 0x21f   :  { %456 = vrcp.f32 %v210_v27 }
 0x222   :  { %v213_v28 = vpop.xlane.xlu1 %212 }
 0x223   :  { %458 = vrcp.f32 %v213_v28 }
 0x229   :  { %v457_v29 = vpop.eup %456 }
 0x22a   :  { %v216_v30 = vmul.f32 %v457_v29, %v210_v27 }
 0x22c   :  { %v218_v31 = vsub.f32 2.0, %v216_v30 }
 0x22d   :  { %v459_v32 = vpop.eup %458 }
 0x22e   :  { %v220_v33 = vmul.f32 %v457_v29, %v218_v31  ;;  %v217_v34 = vmul.f32 %v459_v32, %v213_v28 }
 0x230   :  { %v222_v35 = vmul.f32 %v453_v23, %v220_v33  ;;  %v219_v36 = vsub.f32 2.0, %v217_v34 }
 0x232   :  { %374 = vst.msk [vmem:[#allocation7] sm:$0x1] %vm195_vm2, %v222_v35  ;;  %v221_v37 = vmul.f32 %v459_v32, %v219_v36  ;;  %436 = vmatmul.mubr.msk.f32.vlgmr.msra.gmra.mrb[2].mxu0 %vm224_vm3, %v222_v35 }
 0x234   :  { %v223_v38 = vmul.f32 %v455_v25, %v221_v37 }
 0x236   :  { %375 = vst.msk [vmem:[#allocation7 + $0x1] sm:$0x1] %vm195_vm2, %v223_v38  ;;  %441 = vmatmul.mubr.msk.f32.vlgmr.msra.gmra.mrb[2].mxu1 %vm224_vm3, %v223_v38 }
 0x237   :  { %493 = shalt.err (!%p490_p12)
}
 0x238   :  { %s494_s16 = scalar_lea.hbm %s634_s5, 32 }
 0x239   :  { %p495_p13 = scmp.ne.s32.totalorder %s634_s5, %s494_s16  ;;  %p498_p0 = scmp.lt.u32.totalorder %s494_s16, %s634_s5 }
 0x23b   :  { %p500_p1 = pnand %p498_p0, %p495_p13 }
 0x23d   :  { %503 = shalt.err (!%p500_p1)
}
 0x23e   :  { %s538_s21 = smov 16   ;;  %s539_s22 = smov 1   ;;  %vm371_vm4 = vcmask 253952  }
 0x23f   :  { %399 = dma.vmem_to_hbm [thread:$0]  %s394_s3, 32, %s634_s5, [#allocation8], %s538_s21, %s538_s21, %s539_s22  }
 0x240   :  { %s540_s25 = smov [#allocation6]  }
 0x241   :  { %s381_s26 = sshll.u32 %s540_s25, 4  ;;  %s382_s26 = int_to_ptr.vmem [resolvable:$true] %s381_s26 }
 0x242   :  { %s504_s27 = scalar_lea.vmem %s382_s26, 32  ;;  %p509_p3 = scmp.lt.s32.totalorder %s382_s26, %s382_s26 }
 0x243   :  { %p505_p2 = scmp.ne.s32.totalorder %s382_s26, %s504_s27  ;;  %p510_p4 = scmp.lt.s32.totalorder %s504_s27, %s504_s27 }
 0x245   :  { %p511_p5 = por %p510_p4, %p509_p3 }
 0x247   :  { %p512_p6 = pnand %p511_p5, %p505_p2 }
 0x305   :  { %v294_v39 = vpop.f32.mrb[2].mxu0 }
 0x306   :  { %372 = vst.msk [vmem:[#allocation6] sm:$0x1] %vm371_vm4, %v294_v39  ;;  %v437_v40 = vpop.f32.mrb[3].mxu0 }
 0x309   :  { %v367_v41 = vpop.f32.mrb[2].mxu1 }
 0x30a   :  { %373 = vst.msk [vmem:[#allocation6 + $0x1] sm:$0x1] %vm371_vm4, %v367_v41  ;;  %v442_v42 = vpop.f32.mrb[3].mxu1 }
 0x30b   :  { %515 = shalt.err (!%p512_p6)
}
 0x30c   :  { %s516_s5 = scalar_lea.hbm %s633_s4, 32 }
 0x30d   :  { %p517_p7 = scmp.ne.s32.totalorder %s633_s4, %s516_s5  ;;  %p520_p8 = scmp.lt.u32.totalorder %s516_s5, %s633_s4 }
 0x30f   :  { %p522_p9 = pnand %p520_p8, %p517_p7 }
 0x311   :  { %525 = shalt.err (!%p522_p9)
}
 0x312   :  { %387 = dma.vmem_to_hbm [thread:$0]  %s382_s26, 32, %s633_s4, [#allocation5], %s538_s21, %s538_s21, %s539_s22  }
 0x313   :  { %528 = dma.done.wait [#allocation5], 32  }
 0x314   :  { %529 = vsyncadd [#allocation5], 4294967264 }
 0x315   :  { %530 = dma.done.wait [#allocation8], 32  }
 0x316   :  { %531 = vsyncadd [#allocation8], 4294967264 }
 0x317   :  { %406 = vsyncpa [#allocation4], 1 }
 0x318   :  { %407 = vsyncpa [#allocation5], 1 }
 0x319   :  { %408 = vsyncpa [#allocation8], 1 }

</bundles_post_ra>
